<compile_context>
chip_gen: v7x
topology: tpu7x:2x2x1
jax: 0.10.0
libtpu: 0.0.40
codegen_flags: <defaults>
</compile_context>

<pallas_src>
import random

import numpy as np
import jax
import jax.numpy as jnp
from jax.experimental import pallas as pl
from jax.experimental.pallas import tpu as pltpu


_MAX_BLOCK_BYTES = 2 * 1024 * 1024  # per-block cap; 4 double-buffered blocks fit v5e's 16 MiB scoped VMEM


def _round_up(v, m):
    return ((v + m - 1) // m) * m


def _sublane(dtype):
    # f32 -> 8, bf16 -> 16, int8/u8 -> 32 (packed sublane granularity).
    return {4: 8, 2: 16, 1: 32}.get(jnp.dtype(dtype).itemsize, 8)


def _make_cutout_kernel(x1, x2, y1, y2, tile_h, h_blk_off, num_channels):
    def kernel(img_ref, fill_ref, out_ref):
        # Global row index of the first row of this block.
        h0 = (pl.program_id(1) + h_blk_off) * tile_h
        th, w = out_ref.shape[-2], out_ref.shape[-1]
        row = h0 + jax.lax.broadcasted_iota(jnp.int32, (th, 1), 0)
        col = jax.lax.broadcasted_iota(jnp.int32, (1, w), 1)
        # PIL ImageDraw.rectangle([x1, y1, x2, y2]) is corner-inclusive.
        # x1/x2/y1/y2 are trace-time Python ints -> compares against immediates.
        mask = ((row >= y1) & (row <= y2)) & ((col >= x1) & (col <= x2))
        # One mask serves all channels; the tiny unrolled loop keeps the fill as an
        # SMEM scalar splat (no vector broadcast of a (C,1,1) operand needed).
        for c in range(num_channels):
            fill_c = fill_ref[c].astype(out_ref.dtype)
            out_ref[c] = jnp.where(mask, fill_c, img_ref[c]).astype(out_ref.dtype)

    return kernel


def random_cutout(image, cutout_factor=0.5, seed=0):
    """JAX/Pallas equivalent of RandomCutout.forward (inplace=False semantics).

    image: (N, C, H, W) array, values nominally in [0, 255].
    Returns (new_image, (x1, x2, y1, y2), fill_color).
    """
    N, C, H, W = image.shape

    # ---- host-side randomness, mirroring the PyTorch module (incl. the h/w swap) ----
    np_rng = np.random.RandomState(seed)
    py_rng = random.Random(seed)

    h, w = W, H                      # PIL: image.size == (width, height)
    h_cutout = int(cutout_factor * h)
    w_cutout = int(cutout_factor * w)
    y_c = int(np_rng.randint(h))
    x_c = int(np_rng.randint(w))
    y1 = int(np.clip(y_c - h_cutout // 2, 0, h))
    y2 = int(np.clip(y_c + h_cutout // 2, 0, h))
    x1 = int(np.clip(x_c - w_cutout // 2, 0, w))
    x2 = int(np.clip(x_c + w_cutout // 2, 0, w))
    # Original module draws a 3-tuple RGB; generalized to C channels, same RNG stream.
    fill_color = [py_rng.randint(0, 255) for _ in range(C)]

    # Rows/cols the rectangle actually covers on this image.
    y2_eff = min(y2, H - 1)
    x2_eff = min(x2, W - 1)
    if y1 > y2_eff or x1 > x2_eff:
        # Rectangle lies entirely off the plane (possible for non-square images due
        # to the axis swap) -> nothing to draw; arrays are immutable, return as-is.
        return image, (x1, x2, y1, y2), fill_color

    # ---- tile selection: multiple-of-sublane H tile, capped for scoped VMEM ----
    sub = _sublane(image.dtype)
    itemsize = jnp.dtype(image.dtype).itemsize
    rows_budget = max(sub, (_MAX_BLOCK_BYTES // max(1, C * W * itemsize)) // sub * sub)
    rect_rows = y2_eff - y1 + 1
    # Aim for ~2 H-blocks over the rectangle (keeps v7x's 2 TensorCores busy) while
    # keeping blocks big enough to amortize per-grid-step overhead.
    tile_h = min(rows_budget, max(sub, _round_up(pl.cdiv(rect_rows, 2), sub)))
    if tile_h >= H:
        tile_h = H  # full-extent block is always legal
    h_blk_off = y1 // tile_h
    num_h_blocks = y2_eff // tile_h - h_blk_off + 1

    fill = jnp.asarray(fill_color, dtype=jnp.int32)  # small SMEM operand

    kernel = _make_cutout_kernel(x1, x2, y1, y2, tile_h, h_blk_off, C)

    img_spec = pl.BlockSpec(
        (None, C, tile_h, W),
        lambda n, hb: (n, 0, hb + h_blk_off, 0),
    )

    out = pl.pallas_call(
        kernel,
        out_shape=jax.ShapeDtypeStruct((N, C, H, W), image.dtype),
        grid=(N, num_h_blocks),
        in_specs=[
            img_spec,
            pl.BlockSpec(memory_space=pltpu.MemorySpace.SMEM),
        ],
        out_specs=img_spec,
        # Alias the image buffer to the output so rows outside the cutout incur zero
        # DMA inside the kernel.  Without caller-side donation XLA inserts one full
        # copy (== the original module's inplace=False copy); with donation it is
        # genuinely in-place.
        input_output_aliases={0: 0},
        compiler_params=pltpu.CompilerParams(
            dimension_semantics=("parallel", "parallel"),
        ),
    )(image, fill)
    return out, (x1, x2, y1, y2), fill_color


def _reference(image_np, rect, fill_color):
    """Pure-numpy reference of the same (inclusive-rectangle) fill semantics."""
    x1, x2, y1, y2 = rect
    ref = image_np.copy()
    for c in range(ref.shape[1]):
        ref[:, c, y1:y2 + 1, x1:x2 + 1] = fill_color[c]
    return ref


if __name__ == "__main__":
    key = jax.random.PRNGKey(0)

    # Test 1: small square image (module-typical RGB), batch of 2.
    N, C, H, W = 2, 3, 16, 16
    image = jax.random.uniform(key, (N, C, H, W), dtype=jnp.float32) * 255.0
    image = jax.block_until_ready(image)
    image_np = np.asarray(image)  # snapshot before the (aliased) call

    out, rect, fill_color = random_cutout(image, cutout_factor=0.5, seed=0)
    out = jax.block_until_ready(out)
    np.testing.assert_allclose(np.asarray(out), _reference(image_np, rect, fill_color),
                               rtol=0, atol=0)

    # Test 2: larger image exercising multiple (and possibly partial) H blocks.
    key2 = jax.random.PRNGKey(1)
    image2 = jax.random.uniform(key2, (1, 3, 128, 128), dtype=jnp.float32) * 255.0
    image2 = jax.block_until_ready(image2)
    image2_np = np.asarray(image2)

    out2, rect2, fill2 = random_cutout(image2, cutout_factor=0.5, seed=1234)
    out2 = jax.block_until_ready(out2)
    np.testing.assert_allclose(np.asarray(out2), _reference(image2_np, rect2, fill2),
                               rtol=0, atol=0)

    print("KERNEL_OK")
</pallas_src>

<mosaic_0001>
module attributes {stable_mosaic.version = 11 : i64} {
  func.func @kernel(%arg0: i32, %arg1: i32, %arg2: memref<1x3x8x16xf32, #tpu.memory_space<vmem>>, %arg3: memref<3xi32, #tpu.memory_space<smem>>, %arg4: memref<1x3x8x16xf32, #tpu.memory_space<vmem>>) attributes {dimension_semantics = [#tpu.dimension_semantics<parallel>, #tpu.dimension_semantics<parallel>], iteration_bounds = array<i64: 2, 1>, scalar_prefetch = 0 : i64, scratch_operands = 0 : i64, tpu.core_type = #tpu.core_type<tc>, window_params = [{transform_indices = @transform_0, window_bounds = array<i64: 1, 3, 8, 16>}, {transform_indices = @transform_1, window_bounds = array<i64: 3>}, {transform_indices = @transform_2, window_bounds = array<i64: 1, 3, 8, 16>}]} {
    %c1_i32 = arith.constant 1 : i32
    %0 = arith.addi %arg1, %c1_i32 : i32
    %c8_i32 = arith.constant 8 : i32
    %1 = arith.muli %0, %c8_i32 : i32
    %2 = tpu.iota {dimensions = array<i32: 0>} : vector<8x1xi32>
    %3 = vector.broadcast %1 : i32 to vector<8x1xi32>
    %4 = arith.addi %3, %2 : vector<8x1xi32>
    %5 = tpu.iota {dimensions = array<i32: 1>} : vector<1x16xi32>
    %c8_i32_0 = arith.constant 8 : i32
    %6 = vector.broadcast %c8_i32_0 : i32 to vector<8x1xi32>
    %7 = arith.cmpi sge, %4, %6 : vector<8x1xi32>
    %c16_i32 = arith.constant 16 : i32
    %8 = vector.broadcast %c16_i32 : i32 to vector<8x1xi32>
    %9 = arith.cmpi sle, %4, %8 : vector<8x1xi32>
    %10 = arith.andi %7, %9 : vector<8x1xi1>
    %c11_i32 = arith.constant 11 : i32
    %11 = vector.broadcast %c11_i32 : i32 to vector<1x16xi32>
    %12 = arith.cmpi sge, %5, %11 : vector<1x16xi32>
    %c16_i32_1 = arith.constant 16 : i32
    %13 = vector.broadcast %c16_i32_1 : i32 to vector<1x16xi32>
    %14 = arith.cmpi sle, %5, %13 : vector<1x16xi32>
    %15 = arith.andi %12, %14 : vector<1x16xi1>
    %16 = vector.broadcast %10 : vector<8x1xi1> to vector<8x16xi1>
    %17 = vector.broadcast %15 : vector<1x16xi1> to vector<8x16xi1>
    %18 = arith.andi %16, %17 : vector<8x16xi1>
    %c0 = arith.constant 0 : index
    %19 = memref.load %arg3[%c0] : memref<3xi32, #tpu.memory_space<smem>>
    %20 = arith.sitofp %19 : i32 to f32
    %c0_2 = arith.constant 0 : index
    %c0_3 = arith.constant 0 : index
    %c0_4 = arith.constant 0 : index
    %c0_5 = arith.constant 0 : index
    %21 = vector.load %arg2[%c0_2, %c0_3, %c0_4, %c0_5] : memref<1x3x8x16xf32, #tpu.memory_space<vmem>>, vector<1x1x8x16xf32>
    %22 = vector.shape_cast %21 : vector<1x1x8x16xf32> to vector<8x16xf32>
    %23 = vector.broadcast %20 : f32 to vector<8x16xf32>
    %24 = arith.select %18, %23, %22 : vector<8x16xi1>, vector<8x16xf32>
    %c0_6 = arith.constant 0 : index
    %c0_7 = arith.constant 0 : index
    %c0_8 = arith.constant 0 : index
    %c0_9 = arith.constant 0 : index
    %25 = vector.load %arg4[%c0_6, %c0_7, %c0_8, %c0_9] : memref<1x3x8x16xf32, #tpu.memory_space<vmem>>, vector<1x1x8x16xf32>
    %26 = vector.shape_cast %25 : vector<1x1x8x16xf32> to vector<8x16xf32>
    %27 = vector.shape_cast %24 : vector<8x16xf32> to vector<1x1x8x16xf32>
    tpu.vector_store %arg4[%c0_6, %c0_7, %c0_8, %c0_9], %27 {strides = array<i32>} : memref<1x3x8x16xf32, #tpu.memory_space<vmem>>, vector<1x1x8x16xf32>,
    %c1 = arith.constant 1 : index
    %28 = memref.load %arg3[%c1] : memref<3xi32, #tpu.memory_space<smem>>
    %29 = arith.sitofp %28 : i32 to f32
    %c0_10 = arith.constant 0 : index
    %c1_11 = arith.constant 1 : index
    %c0_12 = arith.constant 0 : index
    %c0_13 = arith.constant 0 : index
    %30 = vector.load %arg2[%c0_10, %c1_11, %c0_12, %c0_13] : memref<1x3x8x16xf32, #tpu.memory_space<vmem>>, vector<1x1x8x16xf32>
    %31 = vector.shape_cast %30 : vector<1x1x8x16xf32> to vector<8x16xf32>
    %32 = vector.broadcast %29 : f32 to vector<8x16xf32>
    %33 = arith.select %18, %32, %31 : vector<8x16xi1>, vector<8x16xf32>
    %c0_14 = arith.constant 0 : index
    %c1_15 = arith.constant 1 : index
    %c0_16 = arith.constant 0 : index
    %c0_17 = arith.constant 0 : index
    %34 = vector.load %arg4[%c0_14, %c1_15, %c0_16, %c0_17] : memref<1x3x8x16xf32, #tpu.memory_space<vmem>>, vector<1x1x8x16xf32>
    %35 = vector.shape_cast %34 : vector<1x1x8x16xf32> to vector<8x16xf32>
    %36 = vector.shape_cast %33 : vector<8x16xf32> to vector<1x1x8x16xf32>
    tpu.vector_store %arg4[%c0_14, %c1_15, %c0_16, %c0_17], %36 {strides = array<i32>} : memref<1x3x8x16xf32, #tpu.memory_space<vmem>>, vector<1x1x8x16xf32>,
    %c2 = arith.constant 2 : index
    %37 = memref.load %arg3[%c2] : memref<3xi32, #tpu.memory_space<smem>>
    %38 = arith.sitofp %37 : i32 to f32
    %c0_18 = arith.constant 0 : index
    %c2_19 = arith.constant 2 : index
    %c0_20 = arith.constant 0 : index
    %c0_21 = arith.constant 0 : index
    %39 = vector.load %arg2[%c0_18, %c2_19, %c0_20, %c0_21] : memref<1x3x8x16xf32, #tpu.memory_space<vmem>>, vector<1x1x8x16xf32>
    %40 = vector.shape_cast %39 : vector<1x1x8x16xf32> to vector<8x16xf32>
    %41 = vector.broadcast %38 : f32 to vector<8x16xf32>
    %42 = arith.select %18, %41, %40 : vector<8x16xi1>, vector<8x16xf32>
    %c0_22 = arith.constant 0 : index
    %c2_23 = arith.constant 2 : index
    %c0_24 = arith.constant 0 : index
    %c0_25 = arith.constant 0 : index
    %43 = vector.load %arg4[%c0_22, %c2_23, %c0_24, %c0_25] : memref<1x3x8x16xf32, #tpu.memory_space<vmem>>, vector<1x1x8x16xf32>
    %44 = vector.shape_cast %43 : vector<1x1x8x16xf32> to vector<8x16xf32>
    %45 = vector.shape_cast %42 : vector<8x16xf32> to vector<1x1x8x16xf32>
    tpu.vector_store %arg4[%c0_22, %c2_23, %c0_24, %c0_25], %45 {strides = array<i32>} : memref<1x3x8x16xf32, #tpu.memory_space<vmem>>, vector<1x1x8x16xf32>,
    return
  }
  func.func @transform_0(%arg0: i32, %arg1: i32) -> (i32, i32, i32, i32) {
    %c1_i32 = arith.constant 1 : i32
    %0 = arith.addi %arg1, %c1_i32 : i32
    %c0_i32 = arith.constant 0 : i32
    %c0_i32_0 = arith.constant 0 : i32
    %c0_i32_1 = arith.constant 0 : i32
    return %arg0, %c0_i32, %0, %c0_i32_0 : i32, i32, i32, i32
  }
  func.func @transform_1(%arg0: i32, %arg1: i32) -> i32 {
    %c0_i32 = arith.constant 0 : i32
    %c0_i32_0 = arith.constant 0 : i32
    return %c0_i32 : i32
  }
  func.func @transform_2(%arg0: i32, %arg1: i32) -> (i32, i32, i32, i32) {
    %c1_i32 = arith.constant 1 : i32
    %0 = arith.addi %arg1, %c1_i32 : i32
    %c0_i32 = arith.constant 0 : i32
    %c0_i32_0 = arith.constant 0 : i32
    %c0_i32_1 = arith.constant 0 : i32
    return %arg0, %c0_i32, %0, %c0_i32_0 : i32, i32, i32, i32
  }
}

</mosaic_0001>

<bundles_post_ra>
// kernel: tpu_custom_call.1
= control target key start
LH: loop header
LB: loop body
LE: loop exit
PB: predicated region body
PF: predicated region fallthrough
CT: control target
= control target key end

     0   :  { %7 = vsyncpa [#allocation3], 0  ;;  %s834_s0 = inlined_call_operand.hbm [shape: f32[2,3,16,16], index: 0, kind: input, shape index: {}, may-alias: {0,2}]   ;;  %s835_s1 = inlined_call_operand.vmem [shape: s32[3], index: 1, kind: input, shape index: {}]   ;;  %s836_s2 = inlined_call_operand.hbm [shape: f32[2,3,16,16], index: 2, kind: output, shape index: {}, may-alias: {0,2}]  }
   0x1   :  { %9 = vsyncpa [#allocation3 + $0x1], 0 }
   0x2   :  { %10 = vsyncpa [#allocation5], 0 }
   0x3   :  { %11 = vsyncpa [#allocation4], 0 }
   0x4   :  { %13 = vsyncpa [#allocation4 + $0x1], 0  ;;  %s614_s9 = smov 0   ;;  %s616_s10 = smov 0  }
   0x5   :  { %s618_s11 = smov 0   ;;  %s620_s12 = smov 0  }
   0x6   :  { %s622_s13 = smov 0   ;;  %s624_s14 = smov 0  }
   0x7 LB: > { %s357_s15 = sadd.s32 4294967295, %s588_s14   ;;  %s358_s16 = sadd.s32 4294967294, %s588_s14   ;;  %s588_s14 = sphi %s624_s14, %s19_s14   ;;  %s584_s13 = sphi %s622_s13, %s861_s13   ;;  %s580_s12 = sphi %s620_s12, %s860_s12   ;;  %s576_s11 = sphi %s618_s11, %s859_s11   ;;  %s572_s10 = sphi %s616_s10, %s858_s10   ;;  %s568_s9 = sphi %s614_s9, %s857_s9  }
   0x8   : > { %s42_s17 = sadd.s32 1, %s576_s11  ;;  %p49_p0 = scmp.ne.s32.totalorder %s576_s11, %s572_s10 }
   0x9   : > { %p50_p1 = scmp.eq.s32.totalorder %s588_s14, 0  ;;  %p55_p2 = scmp.ne.s32.totalorder %s572_s10, %s568_s9 }
   0xa   : > { %p652_p3 = scmp.eq.s32.totalorder %s357_s15, 0  ;;  %p104_p4 = scmp.eq.s32.totalorder %s357_s15, 1 }
   0xb   : > { %p656_p5 = por %p50_p1, %p49_p0  ;;  %p110_p6 = scmp.eq.s32.totalorder %s358_s16, 1 }
   0xc   : > { %s841_s18 = scalar_select %p652_p3, 1, 0 }
   0xd   : > { %p662_p7 = por %p652_p3, %p55_p2  ;;  %p666_p8 = por %p104_p4, %p49_p0 }
   0xe   : > { %p670_p9 = por %p110_p6, %p55_p2  ;;  %p359_p10 = scmp.ge.s32.totalorder %s588_s14, 1 }
   0xf   : > { %s843_s20 = scalar_select %p662_p7, 1, 0 }
  0x10   : > { %s844_s21 = scalar_select %p666_p8, 1, 0 }
  0x11   : > { %s845_s22 = scalar_select %p670_p9, 1, 0 }
  0x12   : > { %p117_p11 = scmp.lt.s32.totalorder %s588_s14, 3  ;;  %s130_s25 = sshll.u32 %s835_s1, 4  ;;  %s131_s25 = int_to_ptr.vmem [resolvable:$true] %s130_s25 }
  0x13   : > { %p397_p0 = scmp.lt.s32.totalorder %s588_s14, 2  ;;  %s31_s29 = sadd.s32 1, %s584_s13 }
  0x14   : > { %p679_p12 = pnand %p359_p10, %p117_p11  ;;  %p700_p6 = scmp.ge.s32.totalorder %s31_s29, 2 }
  0x15   : > { %p689_p2 = pnand %p397_p0, %p656_p5  ;;  %s141_s3 = sand.u32 1, %s576_s11  }
  0x16   : > { %p384_p1 = pneg %p679_p12  ;;  %s455_s4 = scalar_lea.vmem %s131_s25, 16 }
  0x17   : > { %p456_p10 = scmp.ne.s32.totalorder %s131_s25, %s455_s4  ;;  %p463_p13 = scmp.lt.s32.totalorder %s131_s25, %s131_s25 }
  0x18   : > { %p695_p4 = pnand %p384_p1, %p652_p3  ;;  %p464_p9 = scmp.lt.s32.totalorder %s455_s4, %s455_s4 }
  0x1a   : > { %p457_p11 = pneg %p695_p4  ;;  %p465_p8 = por %p464_p9, %p463_p13 }
  0x1c   : > { %p458_p5 = pnand %p457_p11, %p456_p10 }
  0x1e   : > { %p459_p0 = pneg %p458_p5 }
  0x20   : > { %p466_p1 = pnand %p465_p8, %p459_p0 }
  0x22   : > { %469 = shalt.err (!%p466_p1)
}
  0x23   : > { %s590_s5 = smov [#allocation6]   ;;  %s863_s29 = smov (%p700_p6, %s31_s29), 0 }
  0x24   : > { %387 = dma.vmem_to_smem (!%p695_p4), %s131_s25, 16, %s590_s5, [#allocation5]  }
  0x25   : > { %s374_s6 = smul.u32 24, %s141_s3  ;;  %s37_s7 = ssub.s32 %s584_s13, %s863_s29 }
  0x26   : > { %s362_s8 = smul.u32 768, %s584_s13  ;;  %p40_p8 = scmp.eq.s32.totalorder %s37_s7, 0 }
  0x27   : > { %s145_s23 = scalar_lea.vmem [#allocation2], %s374_s6  ;;  %s728_s25 = scalar_lea.sflag [#allocation3], %s141_s3 }
  0x28   : > { %s294_s19 = scalar_lea.hbm %s834_s0, %s362_s8  ;;  %s154_s24 = sshll.u32 %s145_s23, 4  ;;  %s726_s24 = int_to_ptr.vmem [resolvable:$true] %s154_s24 }
  0x29   : > { %s722_s28 = scalar_select %p40_p8, %s576_s11, %s42_s17  }
  0x2a   : > { %s724_s4 = scalar_lea.hbm %s294_s19, 128  ;;  %s500_s30 = scalar_lea.hbm %s294_s19, 512 }
  0x2b   : > { %p471_p9 = scmp.ne.s32.totalorder %s724_s4, %s500_s30  ;;  %p472_p13 = pneg %p689_p2 }
  0x2c   : > { %s475_s6 = scalar_lea.hbm %s834_s0, 1536  ;;  %p476_p10 = scmp.lt.u32.totalorder %s724_s4, %s834_s0 }
  0x2d   : > { %p473_p4 = pnand %p472_p13, %p471_p9  ;;  %p477_p11 = scmp.lt.u32.totalorder %s475_s6, %s500_s30 }
  0x2e   : > { %p479_p0 = scmp.lt.u32.totalorder %s500_s30, %s724_s4 }
  0x2f   : > { %p474_p6 = pneg %p473_p4  ;;  %p478_p5 = por %p477_p11, %p476_p10 }
  0x31   : > { %p480_p1 = por %p479_p0, %p478_p5 }
  0x33   : > { %p481_p8 = pnand %p480_p1, %p474_p6 }
  0x35   : > { %484 = shalt.err (!%p481_p8)
}
  0x36   : > { %s485_s3 = scalar_lea.vmem %s726_s24, 384  ;;  %s591_s15 = smov [#allocation2]  }
  0x37   : > { %p486_p9 = scmp.ne.s32.totalorder %s726_s24, %s485_s3  ;;  %s490_s16 = sshll.u32 %s591_s15, 4  ;;  %s491_s16 = int_to_ptr.vmem [resolvable:$false] %s490_s16 }
  0x38   : > { %s492_s19 = scalar_lea.vmem %s491_s16, 768  ;;  %p493_p7 = scmp.lt.s32.totalorder %s726_s24, %s491_s16 }
  0x39   : > { %p488_p4 = pnand %p486_p9, %p472_p13  ;;  %p494_p10 = scmp.lt.s32.totalorder %s492_s19, %s485_s3 }
  0x3b   : > { %p489_p3 = pneg %p488_p4  ;;  %p495_p11 = por %p494_p10, %p493_p7 }
  0x3d   : > { %p496_p5 = pnand %p495_p11, %p489_p3 }
  0x3f   : > { %499 = shalt.err (!%p496_p5)
}
  0x40   : > { %s592_s23 = smov 256   ;;  %s593_s30 = smov 128  }
  0x41   : > { %s594_s5 = smov 8   ;;  %166 = sbr.rel (%p679_p12) target bundleno = 110 (0x6e), region = 28 }
  0x42   : > { %391 = dma.hbm_to_vmem [thread:$0]  (!%p689_p2), %s724_s4, 384, %s726_s24, %s728_s25, %s592_s23, %s593_s30, %s594_s5  }
  0x43   : > { %s758_s17 = sand.u32 (!%p679_p12), 1, %s572_s10   ;;  %p850_p3 = scmp.ne.s32.totalorder (!%p679_p12), %s843_s20, 0 }
  0x44   : > { %s375_s6 = smul.u32 (!%p679_p12), 24, %s758_s17  ;;  %s169_s7 = scalar_lea.sflag (!%p679_p12), [#allocation3], %s758_s17 }
  0x46   : > { %s172_s8 = scalar_lea.vmem (!%p679_p12), [#allocation2], %s375_s6 }
  0x48   : > { %555 = dma.done.wait (%p850_p3), %s169_s7, 384  }
  0x49   : > { %557 = vsyncadd (%p850_p3), %s169_s7, 4294966912  ;;  %p851_p7 = scmp.ne.s32.totalorder %s841_s18, 0 }
  0x4b   : > { %559 = dma.done.wait (%p851_p7), [#allocation5], 16  }
  0x4c   : > { %561 = vsyncadd (%p851_p7), [#allocation5], 4294967280 }
  0x4d   : > { %181 = sfence }
  0x4e   : > { %v206_v0 = vlaneseq  ;;  %s219_s26 = sld [smem:[#allocation6]]  ;;  %s365_s27 = sld [smem:[#allocation6 + $0x1]]  ;;  %v221_v3 = vld [vmem:[%s172_s8] sm:$0xff]  ;;  %vm224_vm3 = vcmask 130048   ;;  %v366_v4 = vld [vmem:[%s172_s8 + $0x8] sm:$0xff]  ;;  %v369_v6 = vld [vmem:[%s172_s8 + $0x10] sm:$0xff] }
  0x4f   : > { %s368_s24 = sld [smem:[#allocation6 + $0x2]]  ;;  %s197_s4 = scalar_lea.vmem [#allocation7], %s375_s6 }
  0x50   : > { %v207_v1 = vand.u32 127, %v206_v0  ;;  %s258_s25 = sshll.u32 %s197_s4, 4  ;;  %s371_s3 = smul.u32 768, %s580_s12  ;;  %s775_s25 = int_to_ptr.vmem [resolvable:$true] %s258_s25 }
  0x51   : > { %s243_s30 = scalar_lea.sflag [#allocation4], %s758_s17  ;;  %s501_s5 = scalar_lea.vmem %s775_s25, 384 }
  0x52   : > { %vm211_vm0 = vcmp.ge.s32.totalorder %v207_v1, 11  ;;  %vm212_vm1 = vcmp.le.s32.totalorder %v207_v1, 16  ;;  %s311_s12 = scalar_lea.hbm %s836_s2, %s371_s3  ;;  %p502_p12 = scmp.ne.s32.totalorder %s775_s25, %s501_s5 }
  0x53   : > { %vm771_vm2 = vmand %vm211_vm0, %vm212_vm1  ;;  %s784_s23 = scalar_lea.hbm %s311_s12, 128  ;;  %p854_p2 = scmp.ne.s32.totalorder %s844_s21, 0 }
  0x54   : > { %s220_s20 = scvt.s32.f32 %s219_s26  ;;  %s227_s18 = scvt.s32.f32 %s365_s27 }
  0x55   : > { %s235_s19 = scvt.s32.f32 %s368_s24  ;;  %p503_p13 = pnand %p502_p12, %p854_p2 }
  0x56   : > { %v222_v5 = vstv %s220_s20  ;;  %v230_v8 = vstv %s227_s18  ;;  %s595_s6 = smov [#allocation7]  }
  0x57   : > { %v223_v7 = vsel %vm771_vm2, %v222_v5, %v221_v3  ;;  %v231_v9 = vsel %vm771_vm2, %v230_v8, %v366_v4  ;;  %v238_v10 = vstv %s235_s19  ;;  %p504_p6 = pneg %p503_p13  ;;  %s505_s7 = sshll.u32 %s595_s6, 4  ;;  %s506_s7 = int_to_ptr.vmem [resolvable:$false] %s505_s7 }
  0x58   : > { %225 = vst.msk [vmem:[%s197_s4] sm:$0xff] %vm224_vm3, %v223_v7  ;;  %367 = vst.msk [vmem:[%s197_s4 + $0x8] sm:$0xff] %vm224_vm3, %v231_v9  ;;  %v239_v11 = vsel %vm771_vm2, %v238_v10, %v369_v6  ;;  %s507_s8 = scalar_lea.vmem %s506_s7, 768  ;;  %p508_p0 = scmp.lt.s32.totalorder %s775_s25, %s506_s7 }
  0x59   : > { %370 = vst.msk [vmem:[%s197_s4 + $0x10] sm:$0xff] %vm224_vm3, %v239_v11  ;;  %p509_p1 = scmp.lt.s32.totalorder %s507_s8, %s501_s5 }
  0x5b   : > { %p510_p8 = por %p509_p1, %p508_p0 }
  0x5d   : > { %p511_p9 = pnand %p510_p8, %p504_p6 }
  0x5f   : > { %514 = shalt.err (!%p511_p9)
}
  0x60   : > { %s529_s26 = scalar_lea.hbm %s311_s12, 512  ;;  %s519_s4 = scalar_lea.hbm %s836_s2, 1536 }
  0x61   : > { %p516_p4 = scmp.ne.s32.totalorder %s784_s23, %s529_s26  ;;  %p520_p5 = scmp.lt.u32.totalorder %s784_s23, %s836_s2 }
  0x62   : > { %p521_p3 = scmp.lt.u32.totalorder %s519_s4, %s529_s26  ;;  %p523_p12 = scmp.lt.u32.totalorder %s529_s26, %s784_s23 }
  0x63   : > { %p517_p10 = pnand %p516_p4, %p854_p2 }
  0x64   : > { %p522_p7 = por %p521_p3, %p520_p5 }
  0x65   : > { %p518_p11 = pneg %p517_p10 }
  0x66   : > { %p524_p13 = por %p523_p12, %p522_p7 }
  0x68   : > { %p525_p6 = pnand %p524_p13, %p518_p11 }
  0x6a   : > { %528 = shalt.err (!%p525_p6)
}
  0x6b   : > { %s596_s18 = smov 128   ;;  %s597_s15 = smov 256  }
  0x6c   : > { %s598_s16 = smov 8  }
  0x6d   : > { %382 = dma.vmem_to_hbm [thread:$0]  (%p854_p2), %s775_s25, 384, %s784_s23, %s243_s30, %s596_s18, %s597_s15, %s598_s16  }
  0x6e PF: > { %s273_s12 = sand.u32 1, %s568_s9   ;;  %p855_p0 = scmp.ne.s32.totalorder %s845_s22, 0 }
  0x6f   : > { %p856_p1 = scmp.ge.s32.totalorder %s588_s14, 2  ;;  %s274_s19 = scalar_lea.sflag [#allocation4], %s273_s12 }
  0x71   : > { %p393_p8 = pnand %p856_p1, %p855_p0 }
  0x73   : > { %563 = dma.done.wait (!%p393_p8), %s274_s19, 384  }
  0x74   : > { %565 = vsyncadd (!%p393_p8), %s274_s19, 4294966912  ;;  %s19_s14 = sadd.s32 1, %s588_s14   ;;  %s857_s9 = smov %s572_s10 }
  0x75   : > { %p16_p9 = scmp.ge.s32.totalorder %s19_s14, 4   ;;  %s858_s10 = smov %s576_s11 }
  0x76   : > { %s859_s11 = smov %s722_s28  ;;  %s860_s12 = smov %s584_s13 }
  0x77   : > { %s861_s13 = smov %s863_s29  ;;  %18 = sbr.rel (!%p16_p9) target bundleno = 7 (0x7), region = 82 }
  0x7e   :  { %279 = vsyncpa [#allocation3], 1 }
  0x7f   :  { %281 = vsyncpa [#allocation3 + $0x1], 1 }
  0x80   :  { %282 = vsyncpa [#allocation4], 1 }
  0x81   :  { %284 = vsyncpa [#allocation4 + $0x1], 1 }
  0x82   :  { %285 = vsyncpa [#allocation5], 1 }
  0x83   :  { %287 = vsyncpa [#allocation5 + $0x1], 1 }

</bundles_post_ra>
